<compile_context>
chip_gen: v5e
topology: v5e:2x2
jax: 0.10.0
libtpu: 0.0.40
codegen_flags: <defaults>
</compile_context>

<pallas_src>
import functools

import jax
import jax.numpy as jnp
from jax.experimental import pallas as pl
from jax.experimental.pallas import tpu as pltpu


def net_kernel(xt_ref, w1t_ref, b1_ref, w2t_ref, b2_ref, o_ref):
    # xt_ref:  (16, TB)  bf16   (batch along lanes)
    # w1t_ref: (128, 16) bf16   b1_ref: (128, 1) f32
    # w2t_ref: (4, 128)  bf16   b2_ref: (4, 1)   f32
    # o_ref:   (4, TB)   f32    (lane-dense; only the 4 real logit rows)
    xt = xt_ref[...]
    h = jnp.dot(w1t_ref[...], xt, preferred_element_type=jnp.float32)   # (128, TB)
    h = jnp.maximum(h + b1_ref[...], 0.0)                               # f32 epilogue
    y = jnp.dot(w2t_ref[...], h.astype(jnp.bfloat16),
                preferred_element_type=jnp.float32)                     # (4, TB)
    o_ref[...] = y + b2_ref[...]


def _round_up(n, m):
    return (n + m - 1) // m * m


def prepare_params(w1, b1, w2, b2):
    """One-time parameter prep (hoisted out of the per-call path).

    Inputs use (in_features, out_features) layout, i.e. already transposed
    relative to PyTorch's (out, in) storage, so `x @ w + b == x @ W_pt.T + b`.
    Returns the transposed bf16 weights and column-vector f32 biases the
    batch-in-lanes kernel expects.
    """
    w1t = jnp.asarray(w1).T.astype(jnp.bfloat16)              # (128, 16)
    w2t = jnp.asarray(w2).T.astype(jnp.bfloat16)              # (4, 128)
    b1c = jnp.asarray(b1).reshape(128, 1).astype(jnp.float32)
    b2c = jnp.asarray(b2).reshape(4, 1).astype(jnp.float32)
    return w1t, b1c, w2t, b2c


@functools.partial(jax.jit, static_argnames=("block_b",))
def net_forward(x, w1t, b1c, w2t, b2c, *, block_b=2048):
    """x: (B, 4, 4) float32 -> (B, 4) float32 logits."""
    B = x.shape[0]
    xt = x.reshape(B, 16).T                                   # flatten + batch-in-lanes

    # Batch tile: multiple of 128 (lane width), capped at block_b, and chosen
    # so the grid has >= 2 steps whenever the batch is big enough (v7x has
    # 2 TensorCores; "parallel" shards grid steps across them).
    Bp128 = _round_up(B, 128)
    TB = min(block_b, max(128, _round_up(pl.cdiv(Bp128, 2), 128)))
    Bp = _round_up(B, TB)
    if Bp != B:
        xt = jnp.pad(xt, ((0, 0), (0, Bp - B)))
    xt = xt.astype(jnp.bfloat16)

    grid = (Bp // TB,)

    flops = 2 * Bp * (16 * 128 + 128 * 4)
    bytes_accessed = (Bp * 16 * 2           # x read (bf16)
                      + Bp * 4 * 4          # logits written (f32)
                      + (128 * 16 + 4 * 128) * 2 + (128 + 4) * 4)  # params

    out_t = pl.pallas_call(
        net_kernel,
        out_shape=jax.ShapeDtypeStruct((4, Bp), jnp.float32),
        grid=grid,
        in_specs=[
            pl.BlockSpec((16, TB), lambda i: (0, i)),     # x tile, pipelined
            pl.BlockSpec((128, 16), lambda i: (0, 0)),    # W1^T, resident
            pl.BlockSpec((128, 1), lambda i: (0, 0)),     # b1, resident
            pl.BlockSpec((4, 128), lambda i: (0, 0)),     # W2^T, resident
            pl.BlockSpec((4, 1), lambda i: (0, 0)),       # b2, resident
        ],
        out_specs=pl.BlockSpec((4, TB), lambda i: (0, i)),
        compiler_params=pltpu.CompilerParams(
            dimension_semantics=("parallel",)),
        cost_estimate=pl.CostEstimate(
            flops=flops, transcendentals=0, bytes_accessed=bytes_accessed),
    )(xt, w1t, b1c, w2t, b2c)

    # Drop batch padding, transpose back to (B, 4).
    return out_t[:, :B].T


def init_params(key):
    """Deterministic init mimicking nn.Linear's U(-1/sqrt(fan_in), 1/sqrt(fan_in))."""
    k1, k2, k3, k4 = jax.random.split(key, 4)
    bound1 = 1.0 / jnp.sqrt(16.0)
    bound2 = 1.0 / jnp.sqrt(128.0)
    # Stored as (in, out) so the math is x @ W + b (== PyTorch x @ W_pt.T + b).
    w1 = jax.random.uniform(k1, (16, 128), jnp.float32, -bound1, bound1)
    b1 = jax.random.uniform(k2, (128,), jnp.float32, -bound1, bound1)
    w2 = jax.random.uniform(k3, (128, 4), jnp.float32, -bound2, bound2)
    b2 = jax.random.uniform(k4, (4,), jnp.float32, -bound2, bound2)
    return w1, b1, w2, b2


if __name__ == "__main__":
    key = jax.random.PRNGKey(0)
    kx, kp = jax.random.split(key)

    B = 8  # small batch of 2048 boards (padded to one 128-lane tile internally)
    x = jax.random.normal(kx, (B, 4, 4), jnp.float32)
    w1, b1, w2, b2 = init_params(kp)

    # One-time parameter prep (transpose + bf16 cast), then the fused forward.
    w1t, b1c, w2t, b2c = prepare_params(w1, b1, w2, b2)
    out = net_forward(x, w1t, b1c, w2t, b2c)
    out = jax.block_until_ready(out)

    # Pure-JAX f32 reference (same math as the PyTorch forward). The kernel
    # feeds bf16 operands to the MXU with f32 accumulation, so allow bf16-level
    # tolerance.
    ref = jnp.maximum(x.reshape(B, 16) @ w1 + b1, 0.0) @ w2 + b2
    assert out.shape == (B, 4)
    assert jnp.allclose(out, ref, atol=2e-2, rtol=2e-2), (
        f"max abs err {jnp.max(jnp.abs(out - ref))}")

    print("KERNEL_OK")
</pallas_src>

<mosaic_0001>
module attributes {stable_mosaic.version = 11 : i64} {
  func.func @net_kernel(%arg0: i32, %arg1: memref<16x128xbf16, #tpu.memory_space<vmem>>, %arg2: memref<128x16xbf16, #tpu.memory_space<vmem>>, %arg3: memref<128x1xf32, #tpu.memory_space<vmem>>, %arg4: memref<4x128xbf16, #tpu.memory_space<vmem>>, %arg5: memref<4x1xf32, #tpu.memory_space<vmem>>, %arg6: memref<4x128xf32, #tpu.memory_space<vmem>>) attributes {dimension_semantics = [#tpu.dimension_semantics<parallel>], iteration_bounds = array<i64: 1>, scalar_prefetch = 0 : i64, scratch_operands = 0 : i64, tpu.core_type = #tpu.core_type<tc>, window_params = [{transform_indices = @transform_0, window_bounds = array<i64: 16, 128>}, {pipeline_mode = #tpu.pipeline_mode<synchronous>, transform_indices = @transform_1, window_bounds = array<i64: 128, 16>}, {pipeline_mode = #tpu.pipeline_mode<synchronous>, transform_indices = @transform_2, window_bounds = array<i64: 128, 1>}, {pipeline_mode = #tpu.pipeline_mode<synchronous>, transform_indices = @transform_3, window_bounds = array<i64: 4, 128>}, {pipeline_mode = #tpu.pipeline_mode<synchronous>, transform_indices = @transform_4, window_bounds = array<i64: 4, 1>}, {transform_indices = @transform_5, window_bounds = array<i64: 4, 128>}]} {
    %c0 = arith.constant 0 : index
    %c0_0 = arith.constant 0 : index
    %0 = vector.load %arg1[%c0, %c0_0] : memref<16x128xbf16, #tpu.memory_space<vmem>>, vector<16x128xbf16>
    %c0_1 = arith.constant 0 : index
    %c0_2 = arith.constant 0 : index
    %1 = vector.load %arg2[%c0_1, %c0_2] : memref<128x16xbf16, #tpu.memory_space<vmem>>, vector<128x16xbf16>
    %cst = arith.constant dense<0.000000e+00> : vector<128x128xf32>
    %2 = tpu.matmul %1, %0, %cst {dimension_numbers = #tpu.dot_dimension_numbers<[1], [0], [0], [1], [0, 0, 1, 1], [], []>} : vector<128x16xbf16>, vector<16x128xbf16>, vector<128x128xf32> -> vector<128x128xf32>
    %c0_3 = arith.constant 0 : index
    %c0_4 = arith.constant 0 : index
    %3 = vector.load %arg3[%c0_3, %c0_4] : memref<128x1xf32, #tpu.memory_space<vmem>>, vector<128x1xf32>
    %4 = vector.broadcast %3 : vector<128x1xf32> to vector<128x128xf32>
    %5 = arith.addf %2, %4 : vector<128x128xf32>
    %cst_5 = arith.constant 0.000000e+00 : f32
    %6 = vector.broadcast %cst_5 : f32 to vector<128x128xf32>
    %7 = arith.maximumf %5, %6 : vector<128x128xf32>
    %c0_6 = arith.constant 0 : index
    %c0_7 = arith.constant 0 : index
    %8 = vector.load %arg4[%c0_6, %c0_7] : memref<4x128xbf16, #tpu.memory_space<vmem>>, vector<4x128xbf16>
    %9 = arith.truncf %7 : vector<128x128xf32> to vector<128x128xbf16>
    %cst_8 = arith.constant dense<0.000000e+00> : vector<4x128xf32>
    %10 = tpu.matmul %8, %9, %cst_8 {dimension_numbers = #tpu.dot_dimension_numbers<[1], [0], [0], [1], [0, 0, 1, 1], [], []>} : vector<4x128xbf16>, vector<128x128xbf16>, vector<4x128xf32> -> vector<4x128xf32>
    %c0_9 = arith.constant 0 : index
    %c0_10 = arith.constant 0 : index
    %11 = vector.load %arg5[%c0_9, %c0_10] : memref<4x1xf32, #tpu.memory_space<vmem>>, vector<4x1xf32>
    %12 = vector.broadcast %11 : vector<4x1xf32> to vector<4x128xf32>
    %13 = arith.addf %10, %12 : vector<4x128xf32>
    %c0_11 = arith.constant 0 : index
    %c0_12 = arith.constant 0 : index
    %14 = vector.load %arg6[%c0_11, %c0_12] : memref<4x128xf32, #tpu.memory_space<vmem>>, vector<4x128xf32>
    tpu.vector_store %arg6[%c0_11, %c0_12], %13 {strides = array<i32>} : memref<4x128xf32, #tpu.memory_space<vmem>>, vector<4x128xf32>,
    return
  }
  func.func @transform_0(%arg0: i32) -> (i32, i32) {
    %c0_i32 = arith.constant 0 : i32
    %c0_i32_0 = arith.constant 0 : i32
    return %c0_i32, %arg0 : i32, i32
  }
  func.func @transform_1(%arg0: i32) -> (i32, i32) {
    %c0_i32 = arith.constant 0 : i32
    %c0_i32_0 = arith.constant 0 : i32
    %c0_i32_1 = arith.constant 0 : i32
    return %c0_i32, %c0_i32_0 : i32, i32
  }
  func.func @transform_2(%arg0: i32) -> (i32, i32) {
    %c0_i32 = arith.constant 0 : i32
    %c0_i32_0 = arith.constant 0 : i32
    %c0_i32_1 = arith.constant 0 : i32
    return %c0_i32, %c0_i32_0 : i32, i32
  }
  func.func @transform_3(%arg0: i32) -> (i32, i32) {
    %c0_i32 = arith.constant 0 : i32
    %c0_i32_0 = arith.constant 0 : i32
    %c0_i32_1 = arith.constant 0 : i32
    return %c0_i32, %c0_i32_0 : i32, i32
  }
  func.func @transform_4(%arg0: i32) -> (i32, i32) {
    %c0_i32 = arith.constant 0 : i32
    %c0_i32_0 = arith.constant 0 : i32
    %c0_i32_1 = arith.constant 0 : i32
    return %c0_i32, %c0_i32_0 : i32, i32
  }
  func.func @transform_5(%arg0: i32) -> (i32, i32) {
    %c0_i32 = arith.constant 0 : i32
    %c0_i32_0 = arith.constant 0 : i32
    return %c0_i32, %arg0 : i32, i32
  }
}

</mosaic_0001>

<bundles_post_ra>
// kernel: net_forward.1
= control target key start
LH: loop header
LB: loop body
LE: loop exit
PB: predicated region body
PF: predicated region fallthrough
CT: control target
= control target key end

     0   :  { %v363_v0 = vmov 0   ;;  %vm181_vm0 = vcmask 130048   ;;  %s492_s2 = inlined_call_operand.vmem [shape: f32[128,1], index: 2, kind: input, shape index: {}]   ;;  %s493_s0 = inlined_call_operand.vmem [shape: bf16[16,128], index: 0, kind: input, shape index: {}]   ;;  %s494_s1 = inlined_call_operand.vmem [shape: bf16[128,16], index: 1, kind: input, shape index: {}]   ;;  %s495_s4 = inlined_call_operand.vmem [shape: f32[4,1], index: 4, kind: input, shape index: {}]   ;;  %s496_s3 = inlined_call_operand.vmem [shape: bf16[4,128], index: 3, kind: input, shape index: {}]   ;;  %s497_s5 = inlined_call_operand.vmem [shape: f32[4,128], index: 5, kind: output, shape index: {}]  }
   0x1   :  { %360 = vset.pattern.permute.xlu0 %v363_v0  ;;  %v53_v1 = vld [vmem:[%s492_s2 + $0x70] sm:$0xff]  ;;  %v348_v2 = vld [vmem:[%s493_s0] sm:$0xff]  ;;  %361 = vset.pattern.permute.xlu1 %v363_v0  ;;  %v352_v4 = vld [vmem:[%s494_s1 + $0x18] sm:$0xff] }
   0x2   :  { %127 = vperm.xlu0 %360, %v53_v1   ;;  %v349_v3 = vld [vmem:[%s494_s1] sm:$0xff]  ;;  %362 = vset.pattern.permute.xlu2 %v363_v0  ;;  %v355_v6 = vld [vmem:[%s494_s1 + $0x30] sm:$0xff]  ;;  %v54_v8 = vld [vmem:[%s492_s2 + $0x78] sm:$0xff] }
   0x3   :  { %v51_v5 = vld [vmem:[%s492_s2 + $0x60] sm:$0xff]  ;;  %213 = vmatpush.bf16.msra.mxu0 %v348_v2  ;;  %357 = vmatpush.bf16.msra.mxu2 %v348_v2  ;;  %v49_v7 = vld [vmem:[%s492_s2 + $0x50] sm:$0xff]  ;;  %v52_v9 = vld [vmem:[%s492_s2 + $0x68] sm:$0xff] }
   0x4   :  { %358 = vmatpush.bf16.msra.mxu3 %v348_v2  ;;  %117 = vperm.xlu1 %361, %v51_v5   ;;  %v50_v10 = vld [vmem:[%s492_s2 + $0x58] sm:$0xff]  ;;  %v47_v11 = vld [vmem:[%s492_s2 + $0x40] sm:$0xff]  ;;  %v48_v12 = vld [vmem:[%s492_s2 + $0x48] sm:$0xff] }
   0x5   :  { %107 = vperm.xlu2 %362, %v49_v7   ;;  %v350_v13 = vld [vmem:[%s494_s1 + $0x8] sm:$0xff]  ;;  %v353_v14 = vld [vmem:[%s494_s1 + $0x20] sm:$0xff]  ;;  %v356_v15 = vld [vmem:[%s494_s1 + $0x38] sm:$0xff] }
   0x6   :  { %340 = vmatmul.msk.bf16.vlgmr.msra.gmra.mxu0 %vm181_vm0, %v349_v3  ;;  %343 = vmatmul.msk.bf16.vlgmr.msra.gmra.mxu2 %vm181_vm0, %v352_v4  ;;  %v45_v16 = vld [vmem:[%s492_s2 + $0x30] sm:$0xff]  ;;  %v46_v17 = vld [vmem:[%s492_s2 + $0x38] sm:$0xff]  ;;  %v43_v18 = vld [vmem:[%s492_s2 + $0x20] sm:$0xff] }
   0x7   :  { %346 = vmatmul.msk.bf16.vlgmr.msra.gmra.mxu3 %vm181_vm0, %v355_v6  ;;  %v44_v19 = vld [vmem:[%s492_s2 + $0x28] sm:$0xff]  ;;  %v41_v20 = vld [vmem:[%s492_s2 + $0x10] sm:$0xff]  ;;  %v42_v21 = vld [vmem:[%s492_s2 + $0x18] sm:$0xff] }
   0x8   :  { %v351_v22 = vld [vmem:[%s494_s1 + $0x10] sm:$0xff]  ;;  %v354_v23 = vld [vmem:[%s494_s1 + $0x28] sm:$0xff]  ;;  %v39_v24 = vld [vmem:[%s492_s2] sm:$0xff] }
   0x9   :  { %v40_v25 = vld [vmem:[%s492_s2 + $0x8] sm:$0xff]  ;;  %v280_v26 = vld [vmem:[%s495_s4] sm:$0xf] }
   0xa   :  { %132 = vperm.xlu0 %360, %v54_v8  }
   0xc   :  { %122 = vperm.xlu1 %361, %v52_v9  }
   0xd   :  { %112 = vperm.xlu2 %362, %v50_v10  }
  0x12   :  { %97 = vperm.xlu0 %360, %v47_v11  }
  0x14   :  { %102 = vperm.xlu1 %361, %v48_v12  }
  0x15   :  { %87 = vperm.xlu2 %362, %v45_v16  }
  0x16   :  { %341 = vmatmul.msk.bf16.gmra.mxu0 %vm181_vm0, %v350_v13  ;;  %344 = vmatmul.msk.bf16.gmra.mxu2 %vm181_vm0, %v353_v14 }
  0x17   :  { %347 = vmatmul.msk.bf16.gmra.mxu3 %vm181_vm0, %v356_v15 }
  0x1a   :  { %92 = vperm.xlu0 %360, %v46_v17  }
  0x1c   :  { %77 = vperm.xlu1 %361, %v43_v18  }
  0x1d   :  { %82 = vperm.xlu2 %362, %v44_v19  }
  0x22   :  { %67 = vperm.xlu0 %360, %v41_v20  }
  0x24   :  { %72 = vperm.xlu1 %361, %v42_v21  }
  0x25   :  { %57 = vperm.xlu2 %362, %v39_v24  }
  0x26   :  { %342 = vmatmul.msk.bf16.gmra.mxu0 %vm181_vm0, %v351_v22  ;;  %345 = vmatmul.msk.bf16.gmra.mxu2 %vm181_vm0, %v354_v23 }
  0x2a   :  { %62 = vperm.xlu0 %360, %v40_v25  }
  0x2c   :  { %283 = vperm.xlu1 %361, %v280_v26  }
  0x5f   :  { %v108_v36 = vpop.permute.xlu2 %107 }
  0x67   :  { %v113_v45 = vpop.permute.xlu2 %112 }
  0x6f   :  { %v88_v59 = vpop.permute.xlu2 %87 }
  0x74   :  { %v128_v30 = vpop.permute.xlu0 %127 }
  0x76   :  { %v118_v34 = vpop.permute.xlu1 %117 }
  0x77   :  { %v83_v9 = vpop.permute.xlu2 %82 }
  0x7c   :  { %v133_v35 = vpop.permute.xlu0 %132 }
  0x7e   :  { %v123_v40 = vpop.permute.xlu1 %122 }
  0x7f   :  { %v58_v25 = vpop.permute.xlu2 %57 }
  0x83   :  { %v480_v27 = vpop.f32.mrf.mxu0 }
  0x84   :  { %v98_v41 = vpop.permute.xlu0 %97 }
  0x86   :  { %v103_v55 = vpop.permute.xlu1 %102 }
  0x89   :  { %v230_v28 = vpop.f32.mrf.mxu2 }
  0x8a   :  { %v245_v29 = vpop.f32.mrf.mxu3  ;;  %v231_v11 = vadd.f32 %v230_v28, %v88_v59 }
  0x8b   :  { %v482_v31 = vpop.f32.mrf.mxu0  ;;  %v246_v46 = vadd.f32 %v245_v29, %v118_v34 }
  0x8c   :  { %v93_v57 = vpop.permute.xlu0 %92  ;;  %v261_v16 = vmax.f32 %v231_v11, 0.0 }
  0x8d   :  { %v267_v52 = vmax.f32 %v246_v46, 0.0 }
  0x8e   :  { %v78_v1 = vpop.permute.xlu1 %77 }
  0x91   :  { %v232_v32 = vpop.f32.mrf.mxu2 }
  0x92   :  { %v247_v33 = vpop.f32.mrf.mxu3  ;;  %v233_v6 = vadd.f32 %v232_v32, %v93_v57  ;;  %v216_v32 = vadd.f32 %v480_v27, %v58_v25 }
  0x93   :  { %v220_v37 = vpop.f32.mrf.mxu0  ;;  %v248_v47 = vadd.f32 %v247_v33, %v123_v40 }
  0x94   :  { %v68_v5 = vpop.permute.xlu0 %67  ;;  %v262_v13 = vmax.f32 %v233_v6, 0.0 }
  0x95   :  { %v268_v53 = vmax.f32 %v248_v47, 0.0  ;;  %v221_v19 = vadd.f32 %v220_v37, %v68_v5  ;;  %v271_v37 = vld [vmem:[%s496_s3] sm:$0x3] }
  0x96   :  { %v73_v18 = vpop.permute.xlu1 %72  ;;  %v275_v22 = vpack.c.bf16 %v262_v13, %v261_v16 }
  0x97   :  { %v278_v58 = vpack.c.bf16 %v268_v53, %v267_v52  ;;  %v257_v26 = vmax.f32 %v221_v19, 0.0 }
  0x99   :  { %v235_v38 = vpop.f32.mrf.mxu2 }
  0x9a   :  { %v250_v39 = vpop.f32.mrf.mxu3  ;;  %v236_v2 = vadd.f32 %v235_v38, %v98_v41 }
  0x9b   :  { %v251_v42 = vadd.f32 %v250_v39, %v128_v30  ;;  %v222_v48 = vpop.f32.mrf.mxu0 }
  0x9c   :  { %v263_v12 = vmax.f32 %v236_v2, 0.0  ;;  %v223_v20 = vadd.f32 %v222_v48, %v73_v18  ;;  %v63_v23 = vpop.permute.xlu0 %62 }
  0x9d   :  { %v269_v50 = vmax.f32 %v251_v42, 0.0  ;;  %v218_v28 = vadd.f32 %v482_v31, %v63_v23 }
  0x9e   :  { %v258_v29 = vmax.f32 %v223_v20, 0.0  ;;  %v284_v38 = vpop.permute.xlu1 %283 }
  0x9f   :  { %v256_v33 = vmax.f32 %v218_v28, 0.0 }
  0xa0   :  { %v273_v34 = vpack.c.bf16 %v258_v29, %v257_v26 }
  0xa1   :  { %v237_v43 = vpop.f32.mrf.mxu2 }
  0xa2   :  { %v252_v44 = vpop.f32.mrf.mxu3  ;;  %v238_v63 = vadd.f32 %v237_v43, %v103_v55 }
  0xa3   :  { %v253_v49 = vadd.f32 %v252_v44, %v133_v35  ;;  %v225_v60 = vpop.f32.mrf.mxu0  ;;  %v255_v35 = vmax.f32 %v216_v32, 0.0 }
  0xa4   :  { %v264_v7 = vmax.f32 %v238_v63, 0.0  ;;  %v226_v17 = vadd.f32 %v225_v60, %v78_v1 }
  0xa5   :  { %v270_v51 = vmax.f32 %v253_v49, 0.0 }
  0xa6   :  { %v276_v15 = vpack.c.bf16 %v264_v7, %v263_v12  ;;  %v259_v24 = vmax.f32 %v226_v17, 0.0 }
  0xa7   :  { %v279_v54 = vpack.c.bf16 %v270_v51, %v269_v50 }
  0xa9   :  { %286 = vmatpush.bf16.msra.mxu1 %v279_v54  ;;  %v240_v56 = vpop.f32.mrf.mxu2 }
  0xaa   :  { %v241_v61 = vadd.f32 %v240_v56, %v108_v36  ;;  %v272_v36 = vpack.c.bf16 %v256_v33, %v255_v35 }
  0xab   :  { %v227_v10 = vpop.f32.mrf.mxu0 }
  0xac   :  { %v265_v3 = vmax.f32 %v241_v61, 0.0  ;;  %v228_v14 = vadd.f32 %v227_v10, %v83_v9 }
  0xad   :  { %287 = vmatpush.bf16.msra.mxu1 %v278_v58 }
  0xae   :  { %v260_v21 = vmax.f32 %v228_v14, 0.0 }
  0xb0   :  { %v274_v30 = vpack.c.bf16 %v260_v21, %v259_v24 }
  0xb1   :  { %v242_v62 = vpop.f32.mrf.mxu2 }
  0xb2   :  { %v243_v0 = vadd.f32 %v242_v62, %v113_v45 }
  0xb4   :  { %v266_v4 = vmax.f32 %v243_v0, 0.0 }
  0xb6   :  { %v277_v8 = vpack.c.bf16 %v266_v4, %v265_v3 }
  0xb8   :  { %288 = vmatpush.bf16.msra.mxu1 %v277_v8 }
  0xbc   :  { %289 = vmatpush.bf16.msra.mxu1 %v276_v15 }
  0xc0   :  { %290 = vmatpush.bf16.msra.mxu1 %v275_v22 }
  0xc4   :  { %291 = vmatpush.bf16.msra.mxu1 %v274_v30 }
  0xc8   :  { %292 = vmatpush.bf16.msra.mxu1 %v273_v34 }
  0xcc   :  { %293 = vmatpush.bf16.msra.mxu1 %v272_v36 }
  0xcf   :  { %294 = vmatmul.bf16.vlgmr.msra.gmra.mxu1 %v271_v37 }
 0x14c   :  { %v295_v39 = vpop.f32.mrf.mxu1 }
 0x14d   :  { %v296_v40 = vadd.f32 %v295_v39, %v284_v38 }
 0x14f   :  { %299 = vst [vmem:[%s497_s5] sm:$0xf] %v296_v40 }
 0x154   :  { %v297_v27 = vpop.f32.mrf.mxu1 }

</bundles_post_ra>
